<compile_context>
chip_gen: v5e
topology: v5e:2x2
jax: 0.10.0
libtpu: 0.0.40
codegen_flags: <defaults>
</compile_context>

<pallas_src>
import functools

import jax
import jax.numpy as jnp
from jax.experimental import pallas as pl
from jax.experimental.pallas import tpu as pltpu

_LANE = 128  # vreg lane width: keep last dim a multiple of 128 (unmasked vst)


def _round_up(x, m):
    return ((x + m - 1) // m) * m


def _clipped_relu_kernel(x_ref, o_ref, *, clip):
    x = x_ref[...]
    # clamp(relu(x), 0, clip) == min(max(x, 0), clip)
    o_ref[...] = jnp.clip(x, jnp.asarray(0, x.dtype), jnp.asarray(clip, x.dtype))


def _clipped_relu_jnp(x, clip):
    return jnp.clip(x, jnp.asarray(0, x.dtype), jnp.asarray(clip, x.dtype))


def clipped_relu(x, clip=20.0, *, tile_rows=16384, small_n_threshold=65536):
    """Applies clamp(relu(x), 0, clip) elementwise. Accepts any shape (e.g. NCHW)."""
    orig_shape = x.shape
    dtype = x.dtype
    n = x.size
    if n == 0:
        return x

    # Small-input fast path: pallas_call dispatch + a 1-2 step pipeline with no
    # DMA/compute overlap dominates for tiny activations; fused XLA is cheaper.
    if n < small_n_threshold:
        return _clipped_relu_jnp(x, clip)

    itemsize = jnp.dtype(dtype).itemsize
    # Sublane packing multiple: 8 for f32, 16 for bf16/f16, 32 for int8/fp8.
    pack = max(8, 32 // itemsize)

    x_flat = x.reshape(-1)          # contiguous reshape: free (bitcast-level)
    rows = n // _LANE
    n_main = rows * _LANE
    tail = n - n_main               # <= 127 elements

    if rows == 0:                   # entire input is smaller than one lane row
        return _clipped_relu_jnp(x, clip)

    # Kernel operates on the lane-aligned prefix only; the (rare, tiny) tail is
    # handled with plain jnp in the wrapper -- no whole-array jnp.pad copy.
    x_main = (x_flat[:n_main] if tail else x_flat).reshape(rows, _LANE)

    # Block sizing:
    #  * tile_rows rounded to the packing multiple so user overrides can't trip
    #    the (8,128)/packed-tile constraint.
    #  * at least 2 grid steps so v7x's two TensorCores can both stream
    #    (dimension_semantics=("parallel",)); extra step is free on v5e/v6e.
    tile_rows = max(pack, _round_up(int(tile_rows), pack))
    block_rows = min(tile_rows, _round_up(pl.cdiv(rows, 2), pack))
    block_rows = min(block_rows, rows)
    grid = (pl.cdiv(rows, block_rows),)

    out2d = pl.pallas_call(
        functools.partial(_clipped_relu_kernel, clip=clip),
        out_shape=jax.ShapeDtypeStruct((rows, _LANE), dtype),
        grid_spec=pltpu.PrefetchScalarGridSpec(
            num_scalar_prefetch=0,
            grid=grid,
            in_specs=[pl.BlockSpec((block_rows, _LANE), lambda i: (i, 0))],
            out_specs=pl.BlockSpec((block_rows, _LANE), lambda i: (i, 0)),
        ),
        compiler_params=pltpu.CompilerParams(
            dimension_semantics=("parallel",),
            # 2 arrays x 2 pipeline buffers x 8 MiB (f32) = 32 MiB; 48 MiB leaves
            # headroom, raises v5e's 16 MiB default, stays inside v7x's 64 MiB.
            vmem_limit_bytes=48 * 1024 * 1024,
        ),
        cost_estimate=pl.CostEstimate(
            flops=2 * n_main,                      # max + min per element
            transcendentals=0,
            bytes_accessed=2 * n_main * itemsize,  # read + write
        ),
    )(x_main)

    out_flat = out2d.reshape(-1)
    if tail:
        tail_out = _clipped_relu_jnp(x_flat[n_main:], clip)
        out_flat = jnp.concatenate([out_flat, tail_out])
    return out_flat.reshape(orig_shape)


if __name__ == "__main__":
    clip = 20.0

    # 1) Primary check: small NCHW input, forced through the Pallas path
    #    (small_n_threshold=0) -> rows=16, block_rows=8, 2 grid steps.
    x = jax.random.normal(jax.random.PRNGKey(0), (2, 4, 16, 16), dtype=jnp.float32) * 30.0
    y = jax.block_until_ready(clipped_relu(x, clip=clip, small_n_threshold=0))
    y_ref = jnp.clip(jnp.maximum(x, 0.0), 0.0, clip)
    assert y.shape == x.shape and y.dtype == x.dtype
    assert jnp.allclose(y, y_ref), "mismatch vs reference (forced Pallas path)"

    # 2) Default path on the same tiny input takes the jnp fast path.
    y_fast = jax.block_until_ready(clipped_relu(x, clip=clip))
    assert jnp.allclose(y_fast, y_ref), "mismatch vs reference (fast path)"

    # 3) Lane-ragged input (n % 128 != 0) above the fast-path threshold:
    #    exercises aligned-prefix kernel + jnp tail + ragged last grid block.
    x2 = jax.random.normal(jax.random.PRNGKey(1), (3, 181, 181), dtype=jnp.float32) * 30.0
    y2 = jax.block_until_ready(clipped_relu(x2, clip=clip))
    y2_ref = jnp.clip(jnp.maximum(x2, 0.0), 0.0, clip)
    assert y2.shape == x2.shape and jnp.allclose(y2, y2_ref), "mismatch vs reference (ragged case)"

    # 4) bf16 input through the Pallas path checks the 16-row packing rule.
    x3 = (jax.random.normal(jax.random.PRNGKey(2), (2, 4, 16, 16), dtype=jnp.float32) * 30.0
          ).astype(jnp.bfloat16)
    y3 = jax.block_until_ready(clipped_relu(x3, clip=clip, small_n_threshold=0))
    y3_ref = jnp.clip(jnp.maximum(x3, jnp.bfloat16(0)), jnp.bfloat16(0), jnp.bfloat16(clip))
    assert y3.dtype == jnp.bfloat16 and jnp.allclose(
        y3.astype(jnp.float32), y3_ref.astype(jnp.float32)), "mismatch vs reference (bf16 case)"

    print("KERNEL_OK")
</pallas_src>

<mosaic_0001>
module attributes {stable_mosaic.version = 11 : i64} {
  func.func @_clipped_relu_kernel(%arg0: i32, %arg1: memref<8x128xf32, #tpu.memory_space<vmem>>, %arg2: memref<8x128xf32, #tpu.memory_space<vmem>>) attributes {dimension_semantics = [#tpu.dimension_semantics<parallel>], iteration_bounds = array<i64: 2>, scalar_prefetch = 0 : i64, scratch_operands = 0 : i64, tpu.core_type = #tpu.core_type<tc>, window_params = [{transform_indices = @transform_0, window_bounds = array<i64: 8, 128>}, {transform_indices = @transform_1, window_bounds = array<i64: 8, 128>}]} {
    %c0 = arith.constant 0 : index
    %c0_0 = arith.constant 0 : index
    %0 = vector.load %arg1[%c0, %c0_0] : memref<8x128xf32, #tpu.memory_space<vmem>>, vector<8x128xf32>
    %cst = arith.constant 0.000000e+00 : f32
    %cst_1 = arith.constant 2.000000e+01 : f32
    %1 = vector.broadcast %cst : f32 to vector<8x128xf32>
    %2 = arith.maximumf %1, %0 : vector<8x128xf32>
    %3 = vector.broadcast %cst_1 : f32 to vector<8x128xf32>
    %4 = arith.minimumf %3, %2 : vector<8x128xf32>
    %c0_2 = arith.constant 0 : index
    %c0_3 = arith.constant 0 : index
    %5 = vector.load %arg2[%c0_2, %c0_3] : memref<8x128xf32, #tpu.memory_space<vmem>>, vector<8x128xf32>
    tpu.vector_store %arg2[%c0_2, %c0_3], %4 {strides = array<i32>} : memref<8x128xf32, #tpu.memory_space<vmem>>, vector<8x128xf32>,
    return
  }
  func.func @transform_0(%arg0: i32) -> (i32, i32) {
    %c0_i32 = arith.constant 0 : i32
    %c0_i32_0 = arith.constant 0 : i32
    return %arg0, %c0_i32 : i32, i32
  }
  func.func @transform_1(%arg0: i32) -> (i32, i32) {
    %c0_i32 = arith.constant 0 : i32
    %c0_i32_0 = arith.constant 0 : i32
    return %arg0, %c0_i32 : i32, i32
  }
}

</mosaic_0001>

<bundles_post_ra>
// kernel: tpu_custom_call.1
= control target key start
LH: loop header
LB: loop body
LE: loop exit
PB: predicated region body
PF: predicated region fallthrough
CT: control target
= control target key end

     0   :  { %6 = vsyncpa [#allocation3], 0  ;;  %s517_s0 = inlined_call_operand.hbm [shape: f32[16,128], index: 0, kind: input, shape index: {}]   ;;  %s518_s1 = inlined_call_operand.hbm [shape: f32[16,128], index: 1, kind: output, shape index: {}]  }
   0x1   :  { %8 = vsyncpa [#allocation3 + $0x1], 0 }
   0x2   :  { %9 = vsyncpa [#allocation4], 0 }
   0x3   :  { %11 = vsyncpa [#allocation4 + $0x1], 0  ;;  %s390_s6 = smov 0   ;;  %s392_s7 = smov 0  }
   0x4   :  { %s394_s8 = smov 0   ;;  %s396_s9 = smov 0  }
   0x5 LB: > { %s411_s10 = sadd.s32 4294967295, %s378_s9   ;;  %s224_s11 = sadd.s32 4294967294, %s378_s9   ;;  %s378_s9 = sphi %s396_s9, %s528_s9   ;;  %s374_s8 = sphi %s394_s8, %s527_s8   ;;  %s370_s7 = sphi %s392_s7, %s526_s7   ;;  %s366_s6 = sphi %s390_s6, %s525_s6  }
   0x6   : > { %s415_s12 = sadd.s32 1, %s378_s9   ;;  %s24_s13 = sadd.s32 1, %s374_s8 }
   0x7   : > { %s21_s14 = ssub.s32 %s378_s9, %s415_s12  ;;  %p31_p0 = scmp.ne.s32.totalorder %s374_s8, %s370_s7 }
   0x8   : > { %p22_p1 = scmp.eq.s32.totalorder %s21_s14, 0  ;;  %p32_p2 = scmp.eq.s32.totalorder %s378_s9, 0 }
   0x9   : > { %p37_p3 = scmp.ne.s32.totalorder %s370_s7, %s366_s6  ;;  %p38_p4 = scmp.eq.s32.totalorder %s411_s10, 0 }
   0xa   : > { %s427_s15 = scalar_select %p22_p1, %s374_s8, %s24_s13  }
   0xb   : > { %p429_p5 = por %p32_p2, %p31_p0  ;;  %p433_p6 = por %p38_p4, %p37_p3 }
   0xc   : > { %p61_p7 = scmp.eq.s32.totalorder %s411_s10, 1  ;;  %p67_p8 = scmp.eq.s32.totalorder %s224_s11, 1 }
   0xd   : > { %p248_p10 = scmp.lt.s32.totalorder %s378_s9, 2  ;;  %s87_s20 = sand.u32 1, %s374_s8  }
   0xe   : > { %p440_p11 = por %p61_p7, %p31_p0  ;;  %p444_p12 = por %p67_p8, %p37_p3 }
   0xf   : > { %s228_s21 = sshll.u32 %s378_s9, 3  ;;  %s227_s22 = sshll.u32 %s87_s20, 3 }
  0x10   : > { %s95_s25 = scalar_lea.hbm %s517_s0, %s228_s21  ;;  %s91_s27 = scalar_lea.vmem [#allocation2], %s227_s22 }
  0x11   : > { %s97_s26 = sshll.u32 %s95_s25, 4  ;;  %s99_s28 = sshll.u32 %s91_s27, 4  ;;  %s98_s26 = int_to_ptr.hbm [resolvable:$true] %s97_s26  ;;  %s100_s28 = int_to_ptr.vmem [resolvable:$true] %s99_s28 }
  0x12   : > { %p455_p13 = pnand %p248_p10, %p429_p5  ;;  %p229_p0 = scmp.ge.s32.totalorder %s378_s9, 1 }
  0x13   : > { %p104_p1 = scmp.lt.s32.totalorder %s378_s9, 3  ;;  %s88_s30 = scalar_lea.sflag [#allocation3], %s87_s20 }
  0x14   : > { %s282_s2 = sshra.s32 %s98_s26, 4  ;;  %p286_p3 = pneg %p455_p13  ;;  %s283_s2 = int_to_ptr.hbm [resolvable:$true] %s282_s2 }
  0x15   : > { %s284_s3 = scalar_lea.hbm %s283_s2, 8  ;;  %s289_s11 = scalar_lea.hbm %s517_s0, 16 }
  0x16   : > { %p285_p2 = scmp.ne.s32.totalorder %s283_s2, %s284_s3  ;;  %p290_p5 = scmp.lt.s32.totalorder %s283_s2, %s517_s0 }
  0x17   : > { %p291_p8 = scmp.lt.s32.totalorder %s289_s11, %s284_s3 }
  0x18   : > { %p287_p4 = pnand %p286_p3, %p285_p2 }
  0x19   : > { %p292_p10 = por %p291_p8, %p290_p5 }
  0x1a   : > { %p288_p7 = pneg %p287_p4 }
  0x1c   : > { %p293_p9 = pnand %p292_p10, %p288_p7 }
  0x1e   : > { %296 = shalt.err (!%p293_p9)
}
  0x1f   : > { %243 = dma.hbm_to_vmem [thread:$0]  (!%p455_p13), %s98_s26, 128, %s100_s28, %s88_s30  }
  0x20   : > { %p105_p2 = pnand %p229_p0, %p104_p1 }
  0x21   : > { %s476_s16 = sand.u32 (!%p105_p2), 1, %s370_s7  }
  0x22   : > { %108 = sbr.rel (%p105_p2) target bundleno = 55 (0x37), region = 24  ;;  %s230_s20 = sshll.u32 (!%p105_p2), %s476_s16, 3 }
  0x23   : > { %s111_s21 = scalar_lea.sflag (!%p105_p2), [#allocation3], %s476_s16  ;;  %s114_s22 = scalar_lea.vmem (!%p105_p2), [#allocation2], %s230_s20 }
  0x27   : > { %357 = dma.done.wait (%p433_p6), %s111_s21, 128  }
  0x28   : > { %359 = vsyncadd (%p433_p6), %s111_s21, 4294967168  ;;  %s233_s23 = sshll.u32 %s411_s10, 3  ;;  %v134_v0 = vld [vmem:[%s114_s22] sm:$0xff]  ;;  %s133_s27 = scalar_lea.vmem [#allocation5], %s230_s20 }
  0x29   : > { %s149_s26 = scalar_lea.hbm %s518_s1, %s233_s23  ;;  %s151_s28 = sshll.u32 %s133_s27, 4  ;;  %v135_v1 = vmax.f32 %v134_v0, 0.0  ;;  %s152_s28 = int_to_ptr.vmem [resolvable:$true] %s151_s28 }
  0x2a   : > { %s153_s29 = sshll.u32 %s149_s26, 4  ;;  %s139_s30 = scalar_lea.sflag [#allocation4], %s476_s16  ;;  %s154_s29 = int_to_ptr.hbm [resolvable:$true] %s153_s29 }
  0x2b   : > { %v136_v2 = vmin.f32 %v135_v1, 20.0  ;;  %s326_s17 = sshra.s32 %s154_s29, 4  ;;  %s332_s4 = scalar_lea.hbm %s518_s1, 16  ;;  %s327_s17 = int_to_ptr.hbm [resolvable:$true] %s326_s17 }
  0x2c   : > { %s328_s2 = scalar_lea.hbm %s327_s17, 8  ;;  %p333_p0 = scmp.lt.s32.totalorder %s327_s17, %s518_s1 }
  0x2d   : > { %137 = vst [vmem:[%s133_s27] sm:$0xff] %v136_v2  ;;  %p329_p6 = scmp.ne.s32.totalorder %s327_s17, %s328_s2  ;;  %p334_p1 = scmp.lt.s32.totalorder %s332_s4, %s328_s2 }
  0x2f   : > { %p330_p9 = pnand %p329_p6, %p440_p11  ;;  %p335_p3 = por %p334_p1, %p333_p0 }
  0x31   : > { %p331_p13 = pneg %p330_p9 }
  0x33   : > { %p336_p4 = pnand %p335_p3, %p331_p13 }
  0x35   : > { %339 = shalt.err (!%p336_p4)
}
  0x36   : > { %238 = dma.vmem_to_hbm [thread:$0]  (%p440_p11), %s152_s28, 128, %s154_s29, %s139_s30  }
  0x37 PF: > { %s165_s13 = sand.u32 1, %s366_s6   ;;  %p524_p7 = scmp.ge.s32.totalorder %s378_s9, 2 }
  0x38   : > { %s166_s14 = scalar_lea.sflag [#allocation4], %s165_s13 }
  0x39   : > { %p245_p5 = pnand %p524_p7, %p444_p12 }
  0x3b   : > { %p246_p8 = pneg %p245_p5 }
  0x3d   : > { %361 = dma.done.wait (%p246_p8), %s166_s14, 128  }
  0x3e   : > { %363 = vsyncadd (%p246_p8), %s166_s14, 4294967168  ;;  %p14_p10 = scmp.ge.s32.totalorder %s415_s12, 4   ;;  %s525_s6 = smov %s370_s7 }
  0x3f   : > { %s526_s7 = smov %s374_s8  ;;  %s527_s8 = smov %s427_s15 }
  0x40   : > { %s528_s9 = smov %s415_s12  ;;  %16 = sbr.rel (!%p14_p10) target bundleno = 5 (0x5), region = 69 }
  0x45   :  { %172 = vsyncpa [#allocation3], 1 }
  0x46   :  { %174 = vsyncpa [#allocation3 + $0x1], 1 }
  0x47   :  { %175 = vsyncpa [#allocation4], 1 }
  0x48   :  { %177 = vsyncpa [#allocation4 + $0x1], 1 }

</bundles_post_ra>
